<compile_context>
chip_gen: v7x
topology: tpu7x:2x2x1
jax: 0.10.0
libtpu: 0.0.40
codegen_flags: <defaults>
</compile_context>

<pallas_src>
import functools

import jax
import jax.numpy as jnp
from jax.experimental import pallas as pl
from jax.experimental.pallas import tpu as pltpu


def _pad8(c):
    return -(-c // 8) * 8


def _round_up_128(x):
    return -(-x // 128) * 128


def _round_down_128(x):
    return max(128, (x // 128) * 128)


def _combiner_kernel(c1, x1_ref, x2_ref, w_ref, b_ref, o_ref, xcat_ref):
    # x1_ref: (1, C1, T)    x2_ref: (1, C2, T)
    # w_ref : (Cout, C1+C2) b_ref : (Cout, 1)
    # o_ref : (1, Cout, T)  xcat_ref: (C1+C2, T) VMEM scratch
    #
    # Build the channel concat in VMEM only (never in HBM), then one K=C1+C2
    # MXU matmul with f32 accumulation; bias folded into the epilogue.
    xcat_ref[:c1, :] = x1_ref[0]
    xcat_ref[c1:, :] = x2_ref[0]
    acc = jnp.dot(w_ref[...], xcat_ref[...], preferred_element_type=jnp.float32)
    o_ref[0] = (acc + b_ref[...]).astype(o_ref.dtype)


def _pick_tile_hw(hw, n_batch, c1, c2, cout, dtype_bytes,
                  max_tile_hw, vmem_budget_bytes):
    """Largest lane-dense spatial tile that fits the VMEM budget.

    Double-buffered per-lane footprint of the pipelined streams (x1, x2, out)
    plus the single-buffered concat scratch, with 8-sublane padding.
    """
    bytes_per_lane = dtype_bytes * (
        2 * (_pad8(c1) + _pad8(c2) + _pad8(cout)) + _pad8(c1 + c2))
    cap = min(max_tile_hw, vmem_budget_bytes // bytes_per_lane)
    cap = _round_down_128(cap)
    if hw > cap:
        # Multiple-of-128 tile; ragged last tile is handled by the cdiv grid.
        return cap
    # Whole spatial extent fits in one block.
    if n_batch == 1 and hw >= 256:
        # v7x has 2 TensorCores: guarantee >= 2 parallel grid steps.
        return _round_up_128(-(-hw // 2))
    return hw


def dec_combiner_cell_flat(x1_f, x2_f, weight, bias, *,
                           max_tile_hw=16384,
                           vmem_budget_bytes=8 * 1024 * 1024):
    """cat([x1, x2], channel) + 1x1 conv (with bias) on flattened activations.

    Args:
      x1_f:   (N, Cin1, HW)
      x2_f:   (N, Cin2, HW)
      weight: (Cout, Cin1 + Cin2)  -- 1x1 conv weight squeezed over (kh, kw)
      bias:   (Cout,)
    Returns:
      (N, Cout, HW)
    """
    N, C1, HW = x1_f.shape
    _, C2, _ = x2_f.shape
    Cout = weight.shape[0]
    dtype_bytes = jnp.dtype(x1_f.dtype).itemsize

    tile_hw = _pick_tile_hw(HW, N, C1, C2, Cout, dtype_bytes,
                            max_tile_hw, vmem_budget_bytes)
    grid = (N, pl.cdiv(HW, tile_hw))

    b = bias.reshape(Cout, 1)  # broadcasts over the lane (spatial) axis

    flops = 2 * N * HW * Cout * (C1 + C2)
    bytes_accessed = dtype_bytes * (
        N * HW * (C1 + C2 + Cout) + Cout * (C1 + C2) + Cout)

    kernel = functools.partial(_combiner_kernel, C1)

    return pl.pallas_call(
        kernel,
        out_shape=jax.ShapeDtypeStruct((N, Cout, HW), x1_f.dtype),
        grid_spec=pltpu.PrefetchScalarGridSpec(
            num_scalar_prefetch=0,
            grid=grid,
            in_specs=[
                pl.BlockSpec((1, C1, tile_hw), lambda n, j: (n, 0, j)),
                pl.BlockSpec((1, C2, tile_hw), lambda n, j: (n, 0, j)),
                pl.BlockSpec((Cout, C1 + C2), lambda n, j: (0, 0)),
                pl.BlockSpec((Cout, 1), lambda n, j: (0, 0)),
            ],
            out_specs=pl.BlockSpec((1, Cout, tile_hw), lambda n, j: (n, 0, j)),
            scratch_shapes=[pltpu.VMEM((C1 + C2, tile_hw), x1_f.dtype)],
        ),
        compiler_params=pltpu.CompilerParams(
            dimension_semantics=("parallel", "parallel")),
        cost_estimate=pl.CostEstimate(flops=flops,
                                      transcendentals=0,
                                      bytes_accessed=bytes_accessed),
    )(x1_f, x2_f, weight, b)


def dec_combiner_cell(x1, x2, weight, bias, **kwargs):
    """NCHW entry point matching the PyTorch module's forward.

    Args:
      x1:     (N, Cin1, H, W)
      x2:     (N, Cin2, H, W)
      weight: (Cout, Cin1 + Cin2)
      bias:   (Cout,)
    Returns:
      (N, Cout, H, W)
    """
    N, C1, H, W = x1.shape
    _, C2, _, _ = x2.shape
    Cout = weight.shape[0]
    out = dec_combiner_cell_flat(x1.reshape(N, C1, H * W),
                                 x2.reshape(N, C2, H * W),
                                 weight, bias, **kwargs)
    return out.reshape(N, Cout, H, W)


if __name__ == "__main__":
    # Small shapes consistent with the module's forward.
    N, C1, C2, Cout, H, W = 2, 4, 4, 8, 16, 16

    key = jax.random.PRNGKey(0)
    k1, k2, kw, kb = jax.random.split(key, 4)
    x1 = jax.random.normal(k1, (N, C1, H, W), dtype=jnp.float32)
    x2 = jax.random.normal(k2, (N, C2, H, W), dtype=jnp.float32)

    # Deterministic synthetic parameters for Conv2d(C1+C2, Cout, k=1, bias=True).
    weight = jax.random.normal(kw, (Cout, C1 + C2), dtype=jnp.float32) * 0.1
    bias = jax.random.normal(kb, (Cout,), dtype=jnp.float32) * 0.1

    out = dec_combiner_cell(x1, x2, weight, bias)
    out = jax.block_until_ready(out)

    # Pure-JAX reference of cat + 1x1 conv (NCHW).
    x_cat = jnp.concatenate([x1, x2], axis=1)                      # (N, C1+C2, H, W)
    ref = jnp.einsum("nchw,oc->nohw", x_cat, weight) + bias[None, :, None, None]
    assert out.shape == (N, Cout, H, W)
    assert jnp.allclose(out, ref, atol=1e-5, rtol=1e-5)

    print("KERNEL_OK")
</pallas_src>

<mosaic_0001>
module attributes {stable_mosaic.version = 11 : i64} {
  func.func @_combiner_kernel(%arg0: i32, %arg1: i32, %arg2: memref<1x4x256xf32, #tpu.memory_space<vmem>>, %arg3: memref<1x4x256xf32, #tpu.memory_space<vmem>>, %arg4: memref<8x8xf32, #tpu.memory_space<vmem>>, %arg5: memref<8x1xf32, #tpu.memory_space<vmem>>, %arg6: memref<1x8x256xf32, #tpu.memory_space<vmem>>, %arg7: memref<8x256xf32, #tpu.memory_space<vmem>>) attributes {dimension_semantics = [#tpu.dimension_semantics<parallel>, #tpu.dimension_semantics<parallel>], iteration_bounds = array<i64: 2, 1>, scalar_prefetch = 0 : i64, scratch_operands = 1 : i64, tpu.core_type = #tpu.core_type<tc>, window_params = [{transform_indices = @transform_0, window_bounds = array<i64: 1, 4, 256>}, {transform_indices = @transform_1, window_bounds = array<i64: 1, 4, 256>}, {pipeline_mode = #tpu.pipeline_mode<synchronous>, transform_indices = @transform_2, window_bounds = array<i64: 8, 8>}, {pipeline_mode = #tpu.pipeline_mode<synchronous>, transform_indices = @transform_3, window_bounds = array<i64: 8, 1>}, {transform_indices = @transform_4, window_bounds = array<i64: 1, 8, 256>}]} {
    %c0 = arith.constant 0 : index
    %c0_0 = arith.constant 0 : index
    %c0_1 = arith.constant 0 : index
    %0 = vector.load %arg2[%c0, %c0_0, %c0_1] : memref<1x4x256xf32, #tpu.memory_space<vmem>>, vector<1x4x256xf32>
    %1 = vector.shape_cast %0 : vector<1x4x256xf32> to vector<4x256xf32>
    %c0_2 = arith.constant 0 : index
    %c0_3 = arith.constant 0 : index
    %2 = vector.load %arg7[%c0_2, %c0_3] : memref<8x256xf32, #tpu.memory_space<vmem>>, vector<4x256xf32>
    tpu.vector_store %arg7[%c0_2, %c0_3], %1 {strides = array<i32>} : memref<8x256xf32, #tpu.memory_space<vmem>>, vector<4x256xf32>,
    %c0_4 = arith.constant 0 : index
    %c0_5 = arith.constant 0 : index
    %c0_6 = arith.constant 0 : index
    %3 = vector.load %arg3[%c0_4, %c0_5, %c0_6] : memref<1x4x256xf32, #tpu.memory_space<vmem>>, vector<1x4x256xf32>
    %4 = vector.shape_cast %3 : vector<1x4x256xf32> to vector<4x256xf32>
    %c4 = arith.constant 4 : index
    %c0_7 = arith.constant 0 : index
    %5 = vector.load %arg7[%c4, %c0_7] : memref<8x256xf32, #tpu.memory_space<vmem>>, vector<4x256xf32>
    tpu.vector_store %arg7[%c4, %c0_7], %4 {strides = array<i32>} : memref<8x256xf32, #tpu.memory_space<vmem>>, vector<4x256xf32>,
    %c0_8 = arith.constant 0 : index
    %c0_9 = arith.constant 0 : index
    %6 = vector.load %arg4[%c0_8, %c0_9] : memref<8x8xf32, #tpu.memory_space<vmem>>, vector<8x8xf32>
    %c0_10 = arith.constant 0 : index
    %c0_11 = arith.constant 0 : index
    %7 = vector.load %arg7[%c0_10, %c0_11] : memref<8x256xf32, #tpu.memory_space<vmem>>, vector<8x256xf32>
    %cst = arith.constant dense<0.000000e+00> : vector<8x256xf32>
    %8 = tpu.matmul %6, %7, %cst {dimension_numbers = #tpu.dot_dimension_numbers<[1], [0], [0], [1], [0, 0, 1, 1], [], []>} : vector<8x8xf32>, vector<8x256xf32>, vector<8x256xf32> -> vector<8x256xf32>
    %c0_12 = arith.constant 0 : index
    %c0_13 = arith.constant 0 : index
    %9 = vector.load %arg5[%c0_12, %c0_13] : memref<8x1xf32, #tpu.memory_space<vmem>>, vector<8x1xf32>
    %10 = vector.broadcast %9 : vector<8x1xf32> to vector<8x256xf32>
    %11 = arith.addf %8, %10 : vector<8x256xf32>
    %c0_14 = arith.constant 0 : index
    %c0_15 = arith.constant 0 : index
    %c0_16 = arith.constant 0 : index
    %12 = vector.load %arg6[%c0_14, %c0_15, %c0_16] : memref<1x8x256xf32, #tpu.memory_space<vmem>>, vector<1x8x256xf32>
    %13 = vector.shape_cast %12 : vector<1x8x256xf32> to vector<8x256xf32>
    %14 = vector.shape_cast %11 : vector<8x256xf32> to vector<1x8x256xf32>
    tpu.vector_store %arg6[%c0_14, %c0_15, %c0_16], %14 {strides = array<i32>} : memref<1x8x256xf32, #tpu.memory_space<vmem>>, vector<1x8x256xf32>,
    return
  }
  func.func @transform_0(%arg0: i32, %arg1: i32) -> (i32, i32, i32) {
    %c0_i32 = arith.constant 0 : i32
    %c0_i32_0 = arith.constant 0 : i32
    return %arg0, %c0_i32, %arg1 : i32, i32, i32
  }
  func.func @transform_1(%arg0: i32, %arg1: i32) -> (i32, i32, i32) {
    %c0_i32 = arith.constant 0 : i32
    %c0_i32_0 = arith.constant 0 : i32
    return %arg0, %c0_i32, %arg1 : i32, i32, i32
  }
  func.func @transform_2(%arg0: i32, %arg1: i32) -> (i32, i32) {
    %c0_i32 = arith.constant 0 : i32
    %c0_i32_0 = arith.constant 0 : i32
    %c0_i32_1 = arith.constant 0 : i32
    return %c0_i32, %c0_i32_0 : i32, i32
  }
  func.func @transform_3(%arg0: i32, %arg1: i32) -> (i32, i32) {
    %c0_i32 = arith.constant 0 : i32
    %c0_i32_0 = arith.constant 0 : i32
    %c0_i32_1 = arith.constant 0 : i32
    return %c0_i32, %c0_i32_0 : i32, i32
  }
  func.func @transform_4(%arg0: i32, %arg1: i32) -> (i32, i32, i32) {
    %c0_i32 = arith.constant 0 : i32
    %c0_i32_0 = arith.constant 0 : i32
    return %arg0, %c0_i32, %arg1 : i32, i32, i32
  }
}

</mosaic_0001>

<bundles_post_ra>
// kernel: tpu_custom_call.1
= control target key start
LH: loop header
LB: loop body
LE: loop exit
PB: predicated region body
PF: predicated region fallthrough
CT: control target
= control target key end

     0   :  { %9 = vsyncpa [#allocation4], 0  ;;  %s1002_s0 = inlined_call_operand.hbm [shape: f32[2,4,256], index: 0, kind: input, shape index: {}]   ;;  %s1003_s1 = inlined_call_operand.hbm [shape: f32[2,4,256], index: 1, kind: input, shape index: {}]   ;;  %s1004_s2 = inlined_call_operand.vmem [shape: f32[8,8], index: 2, kind: input, shape index: {}]   ;;  %s1005_s3 = inlined_call_operand.vmem [shape: f32[8,1], index: 3, kind: input, shape index: {}]   ;;  %s1006_s4 = inlined_call_operand.hbm [shape: f32[2,8,256], index: 4, kind: output, shape index: {}]  }
   0x1   :  { %11 = vsyncpa [#allocation4 + $0x1], 0 }
   0x2   :  { %12 = vsyncpa [#allocation7], 0 }
   0x3   :  { %14 = vsyncpa [#allocation7 + $0x1], 0 }
   0x4   :  { %15 = vsyncpa [#allocation5], 0 }
   0x5   :  { %17 = vsyncpa [#allocation5 + $0x1], 0  ;;  %s775_s15 = smov 0   ;;  %s777_s16 = smov 0  }
   0x6   :  { %s779_s17 = smov 0   ;;  %s781_s18 = smov 0  }
   0x7   :  { %s783_s19 = smov 0   ;;  %s785_s20 = smov 0  }
   0x8 LB: > { %s502_s21 = sadd.s32 4294967295, %s743_s20   ;;  %s503_s22 = sadd.s32 4294967294, %s743_s20   ;;  %s743_s20 = sphi %s785_s20, %s23_s20   ;;  %s739_s19 = sphi %s783_s19, %s1026_s19   ;;  %s735_s18 = sphi %s781_s18, %s1025_s18   ;;  %s731_s17 = sphi %s779_s17, %s1024_s17   ;;  %s727_s16 = sphi %s777_s16, %s1023_s16   ;;  %s723_s15 = sphi %s775_s15, %s1022_s15  }
   0x9   : > { %s35_s23 = sadd.s32 1, %s739_s19  ;;  %s44_s24 = sadd.s32 1, %s731_s17 }
   0xa   : > { %p37_p0 = scmp.ge.s32.totalorder %s35_s23, 2  ;;  %p51_p1 = scmp.ne.s32.totalorder %s731_s17, %s727_s16 }
   0xb   : > { %p52_p2 = scmp.eq.s32.totalorder %s743_s20, 0  ;;  %p57_p3 = scmp.ne.s32.totalorder %s727_s16, %s723_s15 }
   0xc   : > { %s1028_s23 = smov (%p37_p0, %s35_s23), 0  ;;  %p58_p5 = scmp.eq.s32.totalorder %s502_s21, 0 }
   0xd   : > { %p816_p4 = por %p52_p2, %p51_p1  ;;  %s39_s26 = ssub.s32 %s739_s19, %s1028_s23 }
   0xe   : > { %p153_p6 = scmp.eq.s32.totalorder %s502_s21, 1  ;;  %p42_p7 = scmp.eq.s32.totalorder %s39_s26, 0 }
   0xf   : > { %p822_p8 = por %p58_p5, %p57_p3  ;;  %p159_p10 = scmp.eq.s32.totalorder %s503_s22, 1 }
  0x10   : > { %p826_p9 = por %p153_p6, %p51_p1  ;;  %p542_p13 = scmp.lt.s32.totalorder %s743_s20, 2 }
  0x11   : > { %s1010_s27 = scalar_select %p822_p8, 1, 0 }
  0x12   : > { %s1011_s28 = scalar_select %p826_p9, 1, 0 }
  0x13   : > { %s831_s29 = scalar_select %p42_p7, %s731_s17, %s44_s24  }
  0x14   : > { %p833_p11 = por %p159_p10, %p57_p3  ;;  %s840_s5 = sand.u32 1, %s731_s17  }
  0x15   : > { %s506_s6 = sshll.u32 %s840_s5, 3  ;;  %s522_s7 = sshll.u32 %s739_s19, 7 }
  0x16   : > { %s1012_s30 = scalar_select %p833_p11, 1, 0 }
  0x17   : > { %s849_s10 = scalar_lea.hbm %s1002_s0, %s522_s7  ;;  %s189_s11 = scalar_lea.vmem [#allocation3], %s506_s6 }
  0x18   : > { %s199_s12 = sshll.u32 %s189_s11, 4  ;;  %p857_p0 = pnand %p542_p13, %p816_p4  ;;  %s853_s12 = int_to_ptr.vmem [resolvable:$true] %s199_s12 }
  0x19   : > { %s186_s14 = scalar_lea.sflag [#allocation4], %s840_s5  ;;  %s597_s21 = scalar_lea.hbm %s849_s10, 128 }
  0x1a   : > { %p598_p3 = scmp.ne.s32.totalorder %s849_s10, %s597_s21  ;;  %p599_p5 = pneg %p857_p0 }
  0x1b   : > { %s602_s25 = scalar_lea.hbm %s1002_s0, 256  ;;  %p603_p4 = scmp.lt.u32.totalorder %s849_s10, %s1002_s0 }
  0x1c   : > { %p600_p6 = pnand %p599_p5, %p598_p3  ;;  %p604_p10 = scmp.lt.u32.totalorder %s602_s25, %s597_s21 }
  0x1d   : > { %p606_p12 = scmp.lt.u32.totalorder %s597_s21, %s849_s10 }
  0x1e   : > { %p601_p7 = pneg %p600_p6  ;;  %p605_p13 = por %p604_p10, %p603_p4 }
  0x20   : > { %p607_p1 = por %p606_p12, %p605_p13 }
  0x22   : > { %p608_p2 = pnand %p607_p1, %p601_p7 }
  0x24   : > { %611 = shalt.err (!%p608_p2)
}
  0x25   : > { %s612_s9 = scalar_lea.vmem %s853_s12, 128  ;;  %s745_s11 = smov [#allocation3]  }
  0x26   : > { %p613_p3 = scmp.ne.s32.totalorder %s853_s12, %s612_s9  ;;  %s617_s22 = sshll.u32 %s745_s11, 4  ;;  %s618_s22 = int_to_ptr.vmem [resolvable:$false] %s617_s22 }
  0x27   : > { %s619_s24 = scalar_lea.vmem %s618_s22, 256  ;;  %p620_p9 = scmp.lt.s32.totalorder %s853_s12, %s618_s22 }
  0x28   : > { %p615_p6 = pnand %p613_p3, %p599_p5  ;;  %p621_p4 = scmp.lt.s32.totalorder %s619_s24, %s612_s9 }
  0x2a   : > { %p616_p11 = pneg %p615_p6  ;;  %p622_p10 = por %p621_p4, %p620_p9 }
  0x2c   : > { %p623_p12 = pnand %p622_p10, %p616_p11 }
  0x2e   : > { %626 = shalt.err (!%p623_p12)
}
  0x2f   : > { %534 = dma.hbm_to_vmem [thread:$0]  (!%p857_p0), %s849_s10, 128, %s853_s12, %s186_s14  }
  0x30   : > { %p1014_p1 = scmp.lt.s32.totalorder %s743_s20, 3  ;;  %p1015_p2 = scmp.ge.s32.totalorder %s743_s20, 1 }
  0x31   : > { %s902_s8 = scalar_lea.hbm %s1003_s1, %s522_s7  ;;  %s210_s9 = scalar_lea.vmem [#allocation6], %s506_s6 }
  0x32   : > { %p893_p7 = pnand %p1015_p2, %p1014_p1  ;;  %s220_s11 = sshll.u32 %s210_s9, 4  ;;  %s221_s11 = int_to_ptr.vmem [resolvable:$true] %s220_s11 }
  0x33   : > { %s207_s10 = scalar_lea.sflag [#allocation7], %s840_s5  ;;  %s627_s12 = scalar_lea.hbm %s902_s8, 128 }
  0x34   : > { %s1016_s21 = scalar_select %p893_p7, 1, 0 }
  0x35   : > { %p628_p9 = scmp.ne.s32.totalorder %s902_s8, %s627_s12  ;;  %s632_s7 = scalar_lea.hbm %s1003_s1, 256 }
  0x36   : > { %p633_p3 = scmp.lt.u32.totalorder %s902_s8, %s1003_s1  ;;  %p634_p6 = scmp.lt.u32.totalorder %s632_s7, %s627_s12 }
  0x37   : > { %p630_p11 = pnand %p628_p9, %p599_p5  ;;  %p636_p10 = scmp.lt.u32.totalorder %s627_s12, %s902_s8 }
  0x38   : > { %p635_p4 = por %p634_p6, %p633_p3 }
  0x39   : > { %p631_p13 = pneg %p630_p11 }
  0x3a   : > { %p637_p12 = por %p636_p10, %p635_p4 }
  0x3c   : > { %p638_p1 = pnand %p637_p12, %p631_p13 }
  0x3e   : > { %641 = shalt.err (!%p638_p1)
}
  0x3f   : > { %s642_s5 = scalar_lea.vmem %s221_s11, 128  ;;  %s746_s6 = smov [#allocation6]  }
  0x40   : > { %p643_p2 = scmp.ne.s32.totalorder %s221_s11, %s642_s5  ;;  %s647_s26 = sshll.u32 %s746_s6, 4  ;;  %s648_s26 = int_to_ptr.vmem [resolvable:$false] %s647_s26 }
  0x41   : > { %s649_s9 = scalar_lea.vmem %s648_s26, 256  ;;  %p650_p8 = scmp.lt.s32.totalorder %s221_s11, %s648_s26 }
  0x42   : > { %p645_p9 = pnand %p643_p2, %p599_p5  ;;  %p651_p7 = scmp.lt.s32.totalorder %s649_s9, %s642_s5 }
  0x44   : > { %p646_p11 = pneg %p645_p9  ;;  %p652_p3 = por %p651_p7, %p650_p8 }
  0x46   : > { %p653_p6 = pnand %p652_p3, %p646_p11 }
  0x48   : > { %656 = shalt.err (!%p653_p6)
}
  0x49   : > { %537 = dma.hbm_to_vmem [thread:$0]  (!%p857_p0), %s902_s8, 128, %s221_s11, %s207_s10  }
  0x4a   : > { %p1017_p13 = scmp.ne.s32.totalorder %s1016_s21, 0 }
  0x4b   : > { %s929_s12 = sand.u32 (!%p1017_p13), 1, %s727_s16   ;;  %p1018_p5 = scmp.ne.s32.totalorder (!%p1017_p13), %s1010_s27, 0 }
  0x4c   : > { %229 = sbr.rel (%p1017_p13) target bundleno = 328 (0x148), region = 36  ;;  %s513_s14 = sshll.u32 (!%p1017_p13), %s929_s12, 3 }
  0x4d   : > { %s232_s22 = scalar_lea.sflag (!%p1017_p13), [#allocation4], %s929_s12  ;;  %s235_s7 = scalar_lea.vmem (!%p1017_p13), [#allocation3], %s513_s14 }
  0x53   : > { %710 = dma.done.wait (%p1018_p5), %s232_s22, 128  }
  0x54   : > { %712 = vsyncadd (%p1018_p5), %s232_s22, 4294967168  ;;  %s241_s13 = scalar_lea.sflag [#allocation7], %s929_s12  ;;  %s244_s8 = scalar_lea.vmem [#allocation6], %s513_s14 }
  0x55   : > { %714 = dma.done.wait (%p1018_p5), %s241_s13, 128  }
  0x56   : > { %716 = vsyncadd (%p1018_p5), %s241_s13, 4294967168  ;;  %v747_v0 = vmov 0.0   ;;  %v748_v1 = vmov 0   ;;  %v277_v2 = vld [vmem:[%s235_s7] sm:$0xff]  ;;  %v283_v3 = vld [vmem:[%s244_s8] sm:$0xff]  ;;  %vm298_vm0 = vcmask 64512  }
  0x57   : > { %366 = vmatprep.mubr.f32.mxu0 %v747_v0  ;;  %594 = vset.pattern.permute.xlu0 %v748_v1  ;;  %v279_v4 = vcombine.high %v277_v2, %v277_v2  ;;  %v285_v5 = vcombine.low %v283_v3, %v283_v3  ;;  %288 = vst [vmem:[#allocation2 + $0x8] sm:$0xf0] %v283_v3  ;;  %281 = vst [vmem:[#allocation2] sm:$0xf] %v277_v2  ;;  %v292_v6 = vld [vmem:[%s1005_s3] sm:$0xff]  ;;  %s515_s24 = sshll.u32 %s929_s12, 4 }
  0x58   : > { %295 = vperm.xlu0 %594, %v292_v6   ;;  %v289_v9 = vld [vmem:[%s1004_s2] sm:$0xff]  ;;  %s524_s25 = sshll.u32 %s735_s18, 8  ;;  %s273_s5 = scalar_lea.vmem [#allocation8], %s515_s24 }
  0x59   : > { %282 = vst [vmem:[#allocation2 + $0x8] sm:$0xf] %v279_v4  ;;  %287 = vst [vmem:[#allocation2] sm:$0xf0] %v285_v5  ;;  %s392_s6 = sshll.u32 %s273_s5, 4  ;;  %s953_s14 = scalar_lea.hbm %s1006_s4, %s524_s25  ;;  %s955_s6 = int_to_ptr.vmem [resolvable:$true] %s392_s6 }
  0x5a   : > { %s376_s22 = scalar_lea.sflag [#allocation5], %s929_s12  ;;  %s657_s18 = scalar_lea.vmem %s955_s6, 256 }
  0x5b   : > { %p658_p8 = scmp.ne.s32.totalorder %s955_s6, %s657_s18  ;;  %p1019_p0 = scmp.ne.s32.totalorder %s1011_s28, 0 }
  0x5c   : > { %s749_s7 = smov [#allocation8]  }
  0x5d   : > { %p659_p7 = pnand %p658_p8, %p1019_p0  ;;  %s661_s13 = sshll.u32 %s749_s7, 4  ;;  %s662_s13 = int_to_ptr.vmem [resolvable:$false] %s661_s13 }
  0x5e   : > { %s663_s8 = scalar_lea.vmem %s662_s13, 512  ;;  %p664_p10 = scmp.lt.s32.totalorder %s955_s6, %s662_s13 }
  0x5f   : > { %p660_p4 = pneg %p659_p7  ;;  %p665_p12 = scmp.lt.s32.totalorder %s663_s8, %s657_s18 }
  0x60   : > { %v291_v7 = vld [vmem:[#allocation2 + $0x8] sm:$0xff]  ;;  %v290_v8 = vld [vmem:[#allocation2] sm:$0xff] }
  0x61   : > { %302 = vmatprep.subr.mxu0 %v291_v7  ;;  %p666_p1 = por %p665_p12, %p664_p10 }
  0x62   : > { %303 = vmatpush1.msra.mxu0 %v290_v8 }
  0x63   : > { %516 = vmatmul.mubr.msk.f32.vlgmr.msra.gmra.mrb[0].mxu0 %vm298_vm0, %v289_v9  ;;  %p667_p2 = pnand %p666_p1, %p660_p4 }
  0xd7   : > { %v296_v10 = vpop.permute.xlu0 %295 }
 0x136   : > { %v368_v11 = vpop.f32.mrb[0].mxu0 }
 0x137   : > { %v369_v12 = vadd.f32 %v368_v11, %v296_v10  ;;  %v370_v13 = vpop.f32.mrb[1].mxu0 }
 0x138   : > { %v371_v14 = vadd.f32 %v370_v13, %v296_v10 }
 0x139   : > { %373 = vst [vmem:[%s273_s5] sm:$0xff] %v369_v12 }
 0x13a   : > { %374 = vst [vmem:[%s273_s5 + $0x8] sm:$0xff] %v371_v14 }
 0x13b   : > { %670 = shalt.err (!%p667_p2)
}
 0x13c   : > { %s671_s12 = scalar_lea.hbm %s953_s14, 256  ;;  %s675_s27 = scalar_lea.hbm %s1006_s4, 512 }
 0x13d   : > { %p672_p9 = scmp.ne.s32.totalorder %s953_s14, %s671_s12  ;;  %p676_p6 = scmp.lt.u32.totalorder %s953_s14, %s1006_s4 }
 0x13e   : > { %p677_p13 = scmp.lt.u32.totalorder %s675_s27, %s671_s12  ;;  %p679_p8 = scmp.lt.u32.totalorder %s671_s12, %s953_s14 }
 0x13f   : > { %p673_p11 = pnand %p672_p9, %p1019_p0 }
 0x140   : > { %p678_p5 = por %p677_p13, %p676_p6 }
 0x141   : > { %p674_p3 = pneg %p673_p11 }
 0x142   : > { %p680_p7 = por %p679_p8, %p678_p5 }
 0x144   : > { %p681_p4 = pnand %p680_p7, %p674_p3 }
 0x146   : > { %684 = shalt.err (!%p681_p4)
}
 0x147   : > { %529 = dma.vmem_to_hbm [thread:$0]  (%p1019_p0), %s955_s6, 256, %s953_s14, %s376_s22  }
 0x148 PF: > { %s404_s25 = sand.u32 1, %s723_s15   ;;  %p1020_p10 = scmp.ne.s32.totalorder %s1012_s30, 0 }
 0x149   : > { %p1021_p12 = scmp.ge.s32.totalorder %s743_s20, 2  ;;  %s405_s5 = scalar_lea.sflag [#allocation5], %s404_s25 }
 0x14b   : > { %p539_p1 = pnand %p1021_p12, %p1020_p10 }
 0x14d   : > { %718 = dma.done.wait (!%p539_p1), %s405_s5, 256  }
 0x14e   : > { %720 = vsyncadd (!%p539_p1), %s405_s5, 4294967040  ;;  %s23_s20 = sadd.s32 1, %s743_s20   ;;  %s1022_s15 = smov %s727_s16 }
 0x14f   : > { %p20_p2 = scmp.ge.s32.totalorder %s23_s20, 4   ;;  %s1023_s16 = smov %s731_s17 }
 0x150   : > { %s1024_s17 = smov %s831_s29  ;;  %s1025_s18 = smov %s739_s19 }
 0x151   : > { %s1026_s19 = smov %s1028_s23  ;;  %22 = sbr.rel (!%p20_p2) target bundleno = 8 (0x8), region = 94 }
 0x158   :  { %410 = vsyncpa [#allocation4], 1 }
 0x159   :  { %412 = vsyncpa [#allocation4 + $0x1], 1 }
 0x15a   :  { %413 = vsyncpa [#allocation7], 1 }
 0x15b   :  { %415 = vsyncpa [#allocation7 + $0x1], 1 }
 0x15c   :  { %416 = vsyncpa [#allocation5], 1 }
 0x15d   :  { %418 = vsyncpa [#allocation5 + $0x1], 1 }

</bundles_post_ra>
